<compile_context>
chip_gen: v5e
topology: v5e:2x2
jax: 0.10.0
libtpu: 0.0.40
codegen_flags: <defaults>
</compile_context>

<pallas_src>
import functools

import jax
import jax.numpy as jnp
from jax.experimental import pallas as pl
from jax.experimental.pallas import tpu as pltpu


def _cdiv(a, b):
    return (a + b - 1) // b


def _round_up(a, b):
    return _cdiv(a, b) * b


# -----------------------------------------------------------------------------
# Kernel 1: per-node projection.
#   haT = W1[:, :F] @ h^T    (F, N_pad)   -- acts on edge-source features
#   hbT = W1[:, F:] @ h^T    (F, N_pad)   -- acts on edge-destination features
# -----------------------------------------------------------------------------
def _node_proj_kernel(ht_ref, w1a_ref, w1b_ref, hat_ref, hbt_ref):
    ht = ht_ref[...]                                                   # (F, TN) f32
    hat_ref[...] = jnp.dot(w1a_ref[...], ht, preferred_element_type=jnp.float32)
    hbt_ref[...] = jnp.dot(w1b_ref[...], ht, preferred_element_type=jnp.float32)


# -----------------------------------------------------------------------------
# Kernel 2: per-edge scoring, edges on the lane axis.
#   score[e] = sum_f w2[f] * relu(haT[f, src[e]] + hbT[f, dst[e]] + b1[f])
# Gather of the src/dst columns is a one-hot matmul against the VMEM-resident
# node tables (MXU), so only the int32 ids stream from HBM per edge.
# -----------------------------------------------------------------------------
def _edge_score_kernel(src_ref, dst_ref, hat_ref, hbt_ref, b1_ref, w2_ref, out_ref):
    n_pad = hat_ref.shape[1]
    te = src_ref.shape[-1]

    src = src_ref[0]                                  # (1, TE) int32
    dst = dst_ref[0]                                  # (1, TE) int32

    node_ids = jax.lax.broadcasted_iota(jnp.int32, (n_pad, te), 0)
    onehot_s = (node_ids == src).astype(jnp.float32)  # (N_pad, TE)
    onehot_d = (node_ids == dst).astype(jnp.float32)  # (N_pad, TE)

    # Column gather via matmul: hs[f, e] = haT[f, src[e]]
    hs = jnp.dot(hat_ref[...], onehot_s, preferred_element_type=jnp.float32)  # (F, TE)
    hd = jnp.dot(hbt_ref[...], onehot_d, preferred_element_type=jnp.float32)  # (F, TE)

    hidden = jnp.maximum(hs + hd + b1_ref[...], 0.0)  # bias + ReLU on VPU (f32)
    # F -> 1 layer: VPU multiply + cross-sublane reduce; lane-dense (1, TE) row.
    out_ref[0] = jnp.sum(hidden * w2_ref[...], axis=0, keepdims=True)


def _auto_tile_e(num_edges, max_tile=2048, min_tile=128):
    """Largest tile <= max_tile (multiple of 128 -> lane-dense output) that still
    gives >= 2 grid steps (keeps both v7x TensorCores busy) when possible."""
    tile = max_tile
    while tile > min_tile and _cdiv(num_edges, tile) < 2:
        tile //= 2
    return max(tile, min_tile)


@functools.partial(jax.jit, static_argnames=("tile_e",))
def mlp_predictor_forward(h, src, dst, w1, b1, w2, b2, *, tile_e=None):
    """Pallas implementation of MLPPredictor.forward.

    h:   (N, F) float32 node features
    src: (E,)   int32 edge source node ids
    dst: (E,)   int32 edge destination node ids
    w1:  (F, 2F) weight of nn.Linear(2F, F)   (PyTorch layout: (out, in))
    b1:  (F,)
    w2:  (1, F)  weight of nn.Linear(F, 1)
    b2:  (1,)
    returns (E,) float32 edge scores
    """
    N, F = h.shape
    E = src.shape[0]

    if tile_e is None:
        tile_e = _auto_tile_e(E)
    assert tile_e % 128 == 0, "tile_e must be a multiple of 128 (lane-dense tiles)"

    N_pad = _round_up(max(N, 1), 128)
    E_pad = _round_up(max(E, 1), tile_e)
    G = E_pad // tile_e

    # ---- per-node projection (kernel 1) ----
    h_t = jnp.pad(h.astype(jnp.float32), ((0, N_pad - N), (0, 0))).T    # (F, N_pad)
    w1a = w1[:, :F].astype(jnp.float32)                                 # (F, F)
    w1b = w1[:, F:].astype(jnp.float32)                                 # (F, F)

    tile_n = 512 if N_pad % 512 == 0 else (256 if N_pad % 256 == 0 else 128)
    ha_t, hb_t = pl.pallas_call(
        _node_proj_kernel,
        out_shape=(jax.ShapeDtypeStruct((F, N_pad), jnp.float32),
                   jax.ShapeDtypeStruct((F, N_pad), jnp.float32)),
        grid_spec=pltpu.PrefetchScalarGridSpec(
            num_scalar_prefetch=0,
            grid=(N_pad // tile_n,),
            in_specs=[
                pl.BlockSpec((F, tile_n), lambda i: (0, i)),   # h^T tile
                pl.BlockSpec((F, F), lambda i: (0, 0)),        # W1 first half
                pl.BlockSpec((F, F), lambda i: (0, 0)),        # W1 second half
            ],
            out_specs=(pl.BlockSpec((F, tile_n), lambda i: (0, i)),
                       pl.BlockSpec((F, tile_n), lambda i: (0, i))),
        ),
        compiler_params=pltpu.CompilerParams(
            dimension_semantics=("parallel",)),
    )(h_t, w1a, w1b)

    # ---- per-edge scoring (kernel 2) ----
    src_pad = jnp.pad(src.astype(jnp.int32), (0, E_pad - E)).reshape(G, 1, tile_e)
    dst_pad = jnp.pad(dst.astype(jnp.int32), (0, E_pad - E)).reshape(G, 1, tile_e)
    b1_col = b1.reshape(F, 1).astype(jnp.float32)
    w2_col = w2.reshape(F, 1).astype(jnp.float32)

    cost = pl.CostEstimate(
        flops=int(4 * F * N_pad * E_pad + 6 * F * E_pad),
        transcendentals=0,
        bytes_accessed=int(12 * E_pad + 8 * F * N_pad + 8 * F),
    )

    scores = pl.pallas_call(
        _edge_score_kernel,
        out_shape=jax.ShapeDtypeStruct((G, 1, tile_e), jnp.float32),
        grid_spec=pltpu.PrefetchScalarGridSpec(
            num_scalar_prefetch=0,
            grid=(G,),
            in_specs=[
                pl.BlockSpec((1, 1, tile_e), lambda i: (i, 0, 0)),  # src ids (lane-dense)
                pl.BlockSpec((1, 1, tile_e), lambda i: (i, 0, 0)),  # dst ids (lane-dense)
                pl.BlockSpec((F, N_pad), lambda i: (0, 0)),         # haT (VMEM-resident)
                pl.BlockSpec((F, N_pad), lambda i: (0, 0)),         # hbT (VMEM-resident)
                pl.BlockSpec((F, 1), lambda i: (0, 0)),             # b1 column
                pl.BlockSpec((F, 1), lambda i: (0, 0)),             # w2 column
            ],
            out_specs=pl.BlockSpec((1, 1, tile_e), lambda i: (i, 0, 0)),
        ),
        compiler_params=pltpu.CompilerParams(
            dimension_semantics=("parallel",),
            vmem_limit_bytes=32 * 1024 * 1024,   # safe on v5e/v6e/v7x (<= scoped default)
        ),
        cost_estimate=cost,
    )(src_pad, dst_pad, ha_t, hb_t, b1_col, w2_col)

    # Drop edge padding (padded slots score node 0 vs node 0 — discarded here)
    # and fold in b2 as a scalar add.
    return scores.reshape(E_pad)[:E] + b2[0]


def _pytorch_linear_init(key, out_features, in_features):
    """Deterministic init matching nn.Linear default: U(-1/sqrt(fan_in), +)."""
    kw, kb = jax.random.split(key)
    bound = 1.0 / jnp.sqrt(in_features)
    w = jax.random.uniform(kw, (out_features, in_features),
                           minval=-bound, maxval=bound, dtype=jnp.float32)
    b = jax.random.uniform(kb, (out_features,),
                           minval=-bound, maxval=bound, dtype=jnp.float32)
    return w, b


if __name__ == "__main__":
    h_feats = 32
    num_nodes = 64
    num_edges = 300   # not a tile multiple -> exercises padding; grid stays >= 2

    key = jax.random.PRNGKey(0)
    k_h, k_src, k_dst, k_w1, k_w2 = jax.random.split(key, 5)

    # Node features (the `h` argument of forward).
    h = jax.random.normal(k_h, (num_nodes, h_feats), dtype=jnp.float32)

    # Graph edges (the `g` argument reduced to its edge list).
    src = jax.random.randint(k_src, (num_edges,), 0, num_nodes, dtype=jnp.int32)
    dst = jax.random.randint(k_dst, (num_edges,), 0, num_nodes, dtype=jnp.int32)

    # Parameters: W1 = nn.Linear(2*h_feats, h_feats), W2 = nn.Linear(h_feats, 1)
    w1, b1 = _pytorch_linear_init(k_w1, h_feats, 2 * h_feats)
    w2, b2 = _pytorch_linear_init(k_w2, 1, h_feats)

    scores = mlp_predictor_forward(h, src, dst, w1, b1, w2, b2)
    scores = jax.block_until_ready(scores)

    # Reference check in plain f32 JAX (same math, no Pallas).
    x_ref = jnp.concatenate([h[src], h[dst]], axis=1)
    ref = (jnp.maximum(x_ref @ w1.T + b1, 0.0) @ w2.T + b2)[:, 0]
    assert scores.shape == (num_edges,)
    # All-f32 path; tolerance covers possible reduced-precision MXU passes.
    assert jnp.allclose(scores, ref, atol=2e-2, rtol=2e-2), "mismatch vs reference"

    print("KERNEL_OK")
</pallas_src>

<mosaic_0001>
module attributes {stable_mosaic.version = 11 : i64} {
  func.func @_node_proj_kernel(%arg0: i32, %arg1: memref<32x128xf32, #tpu.memory_space<vmem>>, %arg2: memref<32x32xf32, #tpu.memory_space<vmem>>, %arg3: memref<32x32xf32, #tpu.memory_space<vmem>>, %arg4: memref<32x128xf32, #tpu.memory_space<vmem>>, %arg5: memref<32x128xf32, #tpu.memory_space<vmem>>) attributes {dimension_semantics = [#tpu.dimension_semantics<parallel>], iteration_bounds = array<i64: 1>, scalar_prefetch = 0 : i64, scratch_operands = 0 : i64, tpu.core_type = #tpu.core_type<tc>, window_params = [{transform_indices = @transform_0, window_bounds = array<i64: 32, 128>}, {pipeline_mode = #tpu.pipeline_mode<synchronous>, transform_indices = @transform_1, window_bounds = array<i64: 32, 32>}, {pipeline_mode = #tpu.pipeline_mode<synchronous>, transform_indices = @transform_2, window_bounds = array<i64: 32, 32>}, {transform_indices = @transform_3, window_bounds = array<i64: 32, 128>}, {transform_indices = @transform_4, window_bounds = array<i64: 32, 128>}]} {
    %c0 = arith.constant 0 : index
    %c0_0 = arith.constant 0 : index
    %0 = vector.load %arg1[%c0, %c0_0] : memref<32x128xf32, #tpu.memory_space<vmem>>, vector<32x128xf32>
    %c0_1 = arith.constant 0 : index
    %c0_2 = arith.constant 0 : index
    %1 = vector.load %arg2[%c0_1, %c0_2] : memref<32x32xf32, #tpu.memory_space<vmem>>, vector<32x32xf32>
    %cst = arith.constant dense<0.000000e+00> : vector<32x128xf32>
    %2 = tpu.matmul %1, %0, %cst {dimension_numbers = #tpu.dot_dimension_numbers<[1], [0], [0], [1], [0, 0, 1, 1], [], []>} : vector<32x32xf32>, vector<32x128xf32>, vector<32x128xf32> -> vector<32x128xf32>
    %c0_3 = arith.constant 0 : index
    %c0_4 = arith.constant 0 : index
    %3 = vector.load %arg4[%c0_3, %c0_4] : memref<32x128xf32, #tpu.memory_space<vmem>>, vector<32x128xf32>
    tpu.vector_store %arg4[%c0_3, %c0_4], %2 {strides = array<i32>} : memref<32x128xf32, #tpu.memory_space<vmem>>, vector<32x128xf32>,
    %c0_5 = arith.constant 0 : index
    %c0_6 = arith.constant 0 : index
    %4 = vector.load %arg3[%c0_5, %c0_6] : memref<32x32xf32, #tpu.memory_space<vmem>>, vector<32x32xf32>
    %cst_7 = arith.constant dense<0.000000e+00> : vector<32x128xf32>
    %5 = tpu.matmul %4, %0, %cst_7 {dimension_numbers = #tpu.dot_dimension_numbers<[1], [0], [0], [1], [0, 0, 1, 1], [], []>} : vector<32x32xf32>, vector<32x128xf32>, vector<32x128xf32> -> vector<32x128xf32>
    %c0_8 = arith.constant 0 : index
    %c0_9 = arith.constant 0 : index
    %6 = vector.load %arg5[%c0_8, %c0_9] : memref<32x128xf32, #tpu.memory_space<vmem>>, vector<32x128xf32>
    tpu.vector_store %arg5[%c0_8, %c0_9], %5 {strides = array<i32>} : memref<32x128xf32, #tpu.memory_space<vmem>>, vector<32x128xf32>,
    return
  }
  func.func @transform_0(%arg0: i32) -> (i32, i32) {
    %c0_i32 = arith.constant 0 : i32
    %c0_i32_0 = arith.constant 0 : i32
    return %c0_i32, %arg0 : i32, i32
  }
  func.func @transform_1(%arg0: i32) -> (i32, i32) {
    %c0_i32 = arith.constant 0 : i32
    %c0_i32_0 = arith.constant 0 : i32
    %c0_i32_1 = arith.constant 0 : i32
    return %c0_i32, %c0_i32_0 : i32, i32
  }
  func.func @transform_2(%arg0: i32) -> (i32, i32) {
    %c0_i32 = arith.constant 0 : i32
    %c0_i32_0 = arith.constant 0 : i32
    %c0_i32_1 = arith.constant 0 : i32
    return %c0_i32, %c0_i32_0 : i32, i32
  }
  func.func @transform_3(%arg0: i32) -> (i32, i32) {
    %c0_i32 = arith.constant 0 : i32
    %c0_i32_0 = arith.constant 0 : i32
    return %c0_i32, %arg0 : i32, i32
  }
  func.func @transform_4(%arg0: i32) -> (i32, i32) {
    %c0_i32 = arith.constant 0 : i32
    %c0_i32_0 = arith.constant 0 : i32
    return %c0_i32, %arg0 : i32, i32
  }
}

module attributes {stable_mosaic.version = 11 : i64} {
  func.func @_edge_score_kernel(%arg0: i32, %arg1: memref<1x1x256xi32, #tpu.memory_space<vmem>>, %arg2: memref<1x1x256xi32, #tpu.memory_space<vmem>>, %arg3: memref<32x128xf32, #tpu.memory_space<vmem>>, %arg4: memref<32x128xf32, #tpu.memory_space<vmem>>, %arg5: memref<32x1xf32, #tpu.memory_space<vmem>>, %arg6: memref<32x1xf32, #tpu.memory_space<vmem>>, %arg7: memref<1x1x256xf32, #tpu.memory_space<vmem>>) attributes {dimension_semantics = [#tpu.dimension_semantics<parallel>], iteration_bounds = array<i64: 2>, scalar_prefetch = 0 : i64, scratch_operands = 0 : i64, tpu.core_type = #tpu.core_type<tc>, window_params = [{transform_indices = @transform_0, window_bounds = array<i64: 1, 1, 256>}, {transform_indices = @transform_1, window_bounds = array<i64: 1, 1, 256>}, {pipeline_mode = #tpu.pipeline_mode<synchronous>, transform_indices = @transform_2, window_bounds = array<i64: 32, 128>}, {pipeline_mode = #tpu.pipeline_mode<synchronous>, transform_indices = @transform_3, window_bounds = array<i64: 32, 128>}, {pipeline_mode = #tpu.pipeline_mode<synchronous>, transform_indices = @transform_4, window_bounds = array<i64: 32, 1>}, {pipeline_mode = #tpu.pipeline_mode<synchronous>, transform_indices = @transform_5, window_bounds = array<i64: 32, 1>}, {transform_indices = @transform_6, window_bounds = array<i64: 1, 1, 256>}]} {
    %c0 = arith.constant 0 : index
    %c0_0 = arith.constant 0 : index
    %c0_1 = arith.constant 0 : index
    %0 = vector.load %arg1[%c0, %c0_0, %c0_1] : memref<1x1x256xi32, #tpu.memory_space<vmem>>, vector<1x1x256xi32>
    %1 = vector.shape_cast %0 : vector<1x1x256xi32> to vector<1x256xi32>
    %c0_2 = arith.constant 0 : index
    %c0_3 = arith.constant 0 : index
    %c0_4 = arith.constant 0 : index
    %2 = vector.load %arg2[%c0_2, %c0_3, %c0_4] : memref<1x1x256xi32, #tpu.memory_space<vmem>>, vector<1x1x256xi32>
    %3 = vector.shape_cast %2 : vector<1x1x256xi32> to vector<1x256xi32>
    %4 = tpu.iota {dimensions = array<i32: 0>} : vector<128x256xi32>
    %5 = vector.broadcast %1 : vector<1x256xi32> to vector<128x256xi32>
    %6 = arith.cmpi eq, %4, %5 : vector<128x256xi32>
    %7 = arith.extui %6 : vector<128x256xi1> to vector<128x256xi32>
    %8 = arith.sitofp %7 : vector<128x256xi32> to vector<128x256xf32>
    %9 = vector.broadcast %3 : vector<1x256xi32> to vector<128x256xi32>
    %10 = arith.cmpi eq, %4, %9 : vector<128x256xi32>
    %11 = arith.extui %10 : vector<128x256xi1> to vector<128x256xi32>
    %12 = arith.sitofp %11 : vector<128x256xi32> to vector<128x256xf32>
    %c0_5 = arith.constant 0 : index
    %c0_6 = arith.constant 0 : index
    %13 = vector.load %arg3[%c0_5, %c0_6] : memref<32x128xf32, #tpu.memory_space<vmem>>, vector<32x128xf32>
    %cst = arith.constant dense<0.000000e+00> : vector<32x256xf32>
    %14 = tpu.matmul %13, %8, %cst {dimension_numbers = #tpu.dot_dimension_numbers<[1], [0], [0], [1], [0, 0, 1, 1], [], []>} : vector<32x128xf32>, vector<128x256xf32>, vector<32x256xf32> -> vector<32x256xf32>
    %c0_7 = arith.constant 0 : index
    %c0_8 = arith.constant 0 : index
    %15 = vector.load %arg4[%c0_7, %c0_8] : memref<32x128xf32, #tpu.memory_space<vmem>>, vector<32x128xf32>
    %cst_9 = arith.constant dense<0.000000e+00> : vector<32x256xf32>
    %16 = tpu.matmul %15, %12, %cst_9 {dimension_numbers = #tpu.dot_dimension_numbers<[1], [0], [0], [1], [0, 0, 1, 1], [], []>} : vector<32x128xf32>, vector<128x256xf32>, vector<32x256xf32> -> vector<32x256xf32>
    %17 = arith.addf %14, %16 : vector<32x256xf32>
    %c0_10 = arith.constant 0 : index
    %c0_11 = arith.constant 0 : index
    %18 = vector.load %arg5[%c0_10, %c0_11] : memref<32x1xf32, #tpu.memory_space<vmem>>, vector<32x1xf32>
    %19 = vector.broadcast %18 : vector<32x1xf32> to vector<32x256xf32>
    %20 = arith.addf %17, %19 : vector<32x256xf32>
    %cst_12 = arith.constant 0.000000e+00 : f32
    %21 = vector.broadcast %cst_12 : f32 to vector<32x256xf32>
    %22 = arith.maximumf %20, %21 : vector<32x256xf32>
    %c0_13 = arith.constant 0 : index
    %c0_14 = arith.constant 0 : index
    %23 = vector.load %arg6[%c0_13, %c0_14] : memref<32x1xf32, #tpu.memory_space<vmem>>, vector<32x1xf32>
    %24 = vector.broadcast %23 : vector<32x1xf32> to vector<32x256xf32>
    %25 = arith.mulf %22, %24 : vector<32x256xf32>
    %cst_15 = arith.constant dense<0.000000e+00> : vector<256xf32>
    %26 = vector.multi_reduction <add>, %25, %cst_15 [0] : vector<32x256xf32> to vector<256xf32>
    %27 = vector.shape_cast %26 : vector<256xf32> to vector<1x256xf32>
    %c0_16 = arith.constant 0 : index
    %c0_17 = arith.constant 0 : index
    %c0_18 = arith.constant 0 : index
    %28 = vector.load %arg7[%c0_16, %c0_17, %c0_18] : memref<1x1x256xf32, #tpu.memory_space<vmem>>, vector<1x1x256xf32>
    %29 = vector.shape_cast %28 : vector<1x1x256xf32> to vector<1x256xf32>
    %30 = vector.shape_cast %27 : vector<1x256xf32> to vector<1x1x256xf32>
    tpu.vector_store %arg7[%c0_16, %c0_17, %c0_18], %30 {strides = array<i32>} : memref<1x1x256xf32, #tpu.memory_space<vmem>>, vector<1x1x256xf32>,
    return
  }
  func.func @transform_0(%arg0: i32) -> (i32, i32, i32) {
    %c0_i32 = arith.constant 0 : i32
    %c0_i32_0 = arith.constant 0 : i32
    %c0_i32_1 = arith.constant 0 : i32
    return %arg0, %c0_i32, %c0_i32_0 : i32, i32, i32
  }
  func.func @transform_1(%arg0: i32) -> (i32, i32, i32) {
    %c0_i32 = arith.constant 0 : i32
    %c0_i32_0 = arith.constant 0 : i32
    %c0_i32_1 = arith.constant 0 : i32
    return %arg0, %c0_i32, %c0_i32_0 : i32, i32, i32
  }
  func.func @transform_2(%arg0: i32) -> (i32, i32) {
    %c0_i32 = arith.constant 0 : i32
    %c0_i32_0 = arith.constant 0 : i32
    %c0_i32_1 = arith.constant 0 : i32
    return %c0_i32, %c0_i32_0 : i32, i32
  }
  func.func @transform_3(%arg0: i32) -> (i32, i32) {
    %c0_i32 = arith.constant 0 : i32
    %c0_i32_0 = arith.constant 0 : i32
    %c0_i32_1 = arith.constant 0 : i32
    return %c0_i32, %c0_i32_0 : i32, i32
  }
  func.func @transform_4(%arg0: i32) -> (i32, i32) {
    %c0_i32 = arith.constant 0 : i32
    %c0_i32_0 = arith.constant 0 : i32
    %c0_i32_1 = arith.constant 0 : i32
    return %c0_i32, %c0_i32_0 : i32, i32
  }
  func.func @transform_5(%arg0: i32) -> (i32, i32) {
    %c0_i32 = arith.constant 0 : i32
    %c0_i32_0 = arith.constant 0 : i32
    %c0_i32_1 = arith.constant 0 : i32
    return %c0_i32, %c0_i32_0 : i32, i32
  }
  func.func @transform_6(%arg0: i32) -> (i32, i32, i32) {
    %c0_i32 = arith.constant 0 : i32
    %c0_i32_0 = arith.constant 0 : i32
    %c0_i32_1 = arith.constant 0 : i32
    return %arg0, %c0_i32, %c0_i32_0 : i32, i32, i32
  }
}

</mosaic_0001>

<bundles_post_ra>
// kernel: mlp_predictor_forward.2
= control target key start
LH: loop header
LB: loop body
LE: loop exit
PB: predicated region body
PF: predicated region fallthrough
CT: control target
= control target key end

     0   :  { %vm24_vm0 = vcmask 261120   ;;  %s236_s0 = inlined_call_operand.vmem [shape: f32[32,128], index: 0, kind: input, shape index: {}]   ;;  %s237_s1 = inlined_call_operand.vmem [shape: f32[32,32], index: 1, kind: input, shape index: {}]   ;;  %s238_s2 = inlined_call_operand.vmem [shape: f32[32,32], index: 2, kind: input, shape index: {}]   ;;  %s239_s3 = inlined_call_operand.vmem [shape: f32[32,128], index: 3, kind: output, shape index: {0}]   ;;  %s240_s4 = inlined_call_operand.vmem [shape: f32[32,128], index: 4, kind: output, shape index: {1}]  }
   0x1   :  { %v19_v0 = vld [vmem:[%s236_s0 + $0x18] sm:$0xff]  ;;  %v18_v1 = vld [vmem:[%s236_s0 + $0x10] sm:$0xff]  ;;  %v17_v2 = vld [vmem:[%s236_s0 + $0x8] sm:$0xff] }
   0x2   :  { %135 = vmatpush.msra.mxu2 %v19_v0  ;;  %139 = vmatpush.msra.mxu3 %v19_v0  ;;  %v16_v3 = vld [vmem:[%s236_s0] sm:$0xff]  ;;  %v22_v4 = vld [vmem:[%s237_s1 + $0x10] sm:$0xff]  ;;  %v23_v8 = vld [vmem:[%s237_s1 + $0x18] sm:$0xff] }
   0x3   :  { %49 = vmatpush.msra.mxu0 %v19_v0  ;;  %98 = vmatpush.msra.mxu1 %v19_v0  ;;  %v72_v5 = vld [vmem:[%s238_s2 + $0x10] sm:$0xff]  ;;  %v20_v6 = vld [vmem:[%s237_s1] sm:$0xff]  ;;  %v73_v9 = vld [vmem:[%s238_s2 + $0x18] sm:$0xff] }
   0x4   :  { %136 = vmatpush.msra.mxu2 %v18_v1  ;;  %140 = vmatpush.msra.mxu3 %v18_v1  ;;  %v70_v7 = vld [vmem:[%s238_s2] sm:$0xff]  ;;  %v21_v10 = vld [vmem:[%s237_s1 + $0x8] sm:$0xff] }
   0x5   :  { %50 = vmatpush.msra.mxu0 %v18_v1  ;;  %99 = vmatpush.msra.mxu1 %v18_v1  ;;  %v71_v11 = vld [vmem:[%s238_s2 + $0x8] sm:$0xff] }
   0x6   :  { %137 = vmatpush.msra.mxu2 %v17_v2  ;;  %141 = vmatpush.msra.mxu3 %v17_v2 }
   0x7   :  { %51 = vmatpush.msra.mxu0 %v17_v2  ;;  %100 = vmatpush.msra.mxu1 %v17_v2 }
   0x8   :  { %138 = vmatpush.msra.mxu2 %v16_v3  ;;  %142 = vmatpush.msra.mxu3 %v16_v3 }
   0x9   :  { %129 = vmatmul.msk.f32.vlgmr.msra.gmra.mxu2 %vm24_vm0, %v22_v4  ;;  %133 = vmatmul.msk.f32.vlgmr.msra.gmra.mxu3 %vm24_vm0, %v72_v5 }
   0xa   :  { %52 = vmatpush.msra.mxu0 %v16_v3  ;;  %101 = vmatpush.msra.mxu1 %v16_v3 }
   0xb   :  { %127 = vmatmul.msk.f32.vlgmr.msra.gmra.mxu0 %vm24_vm0, %v20_v6  ;;  %131 = vmatmul.msk.f32.vlgmr.msra.gmra.mxu1 %vm24_vm0, %v70_v7 }
  0x11   :  { %130 = vmatmul.msk.f32.gmra.mxu2 %vm24_vm0, %v23_v8  ;;  %134 = vmatmul.msk.f32.gmra.mxu3 %vm24_vm0, %v73_v9 }
  0x13   :  { %128 = vmatmul.msk.f32.gmra.mxu0 %vm24_vm0, %v21_v10  ;;  %132 = vmatmul.msk.f32.gmra.mxu1 %vm24_vm0, %v71_v11 }
  0x88   :  { %v54_v12 = vpop.f32.mrf.mxu0  ;;  %v103_v13 = vpop.f32.mrf.mxu1 }
  0x89   :  { %66 = vst [vmem:[%s239_s3] sm:$0xff] %v54_v12 }
  0x8a   :  { %115 = vst [vmem:[%s240_s4] sm:$0xff] %v103_v13 }
  0x8c   :  { %v60_v14 = vpop.f32.mrf.mxu2  ;;  %v109_v15 = vpop.f32.mrf.mxu3 }
  0x8d   :  { %68 = vst [vmem:[%s239_s3 + $0x10] sm:$0xff] %v60_v14 }
  0x8e   :  { %117 = vst [vmem:[%s240_s4 + $0x10] sm:$0xff] %v109_v15 }
  0x90   :  { %v57_v16 = vpop.f32.mrf.mxu0  ;;  %v106_v17 = vpop.f32.mrf.mxu1 }
  0x91   :  { %67 = vst [vmem:[%s239_s3 + $0x8] sm:$0xff] %v57_v16 }
  0x92   :  { %116 = vst [vmem:[%s240_s4 + $0x8] sm:$0xff] %v106_v17 }
  0x94   :  { %v63_v18 = vpop.f32.mrf.mxu2  ;;  %v112_v19 = vpop.f32.mrf.mxu3 }
  0x95   :  { %69 = vst [vmem:[%s239_s3 + $0x18] sm:$0xff] %v63_v18 }
  0x96   :  { %118 = vst [vmem:[%s240_s4 + $0x18] sm:$0xff] %v112_v19 }

// kernel: mlp_predictor_forward.3
= control target key start
LH: loop header
LB: loop body
LE: loop exit
PB: predicated region body
PF: predicated region fallthrough
CT: control target
= control target key end

     0   :  { %s965_s21 = smov 0   ;;  %s1197_s0 = inlined_call_operand.vmem [shape: s32[2,1,256], index: 0, kind: input, shape index: {}]   ;;  %s1198_s1 = inlined_call_operand.vmem [shape: s32[2,1,256], index: 1, kind: input, shape index: {}]   ;;  %s1199_s2 = inlined_call_operand.vmem [shape: f32[32,128], index: 2, kind: input, shape index: {}]   ;;  %s1200_s3 = inlined_call_operand.vmem [shape: f32[32,128], index: 3, kind: input, shape index: {}]   ;;  %s1201_s4 = inlined_call_operand.vmem [shape: f32[32,1], index: 4, kind: input, shape index: {}]   ;;  %s1202_s5 = inlined_call_operand.vmem [shape: f32[32,1], index: 5, kind: input, shape index: {}]   ;;  %s1203_s6 = inlined_call_operand.vmem [shape: f32[2,1,256], index: 6, kind: output, shape index: {}]  }
   0x1 LB: > { %s769_s22 = sadd.s32 4294967295, %s926_s21   ;;  %p773_p0 = scmp.ge.s32.totalorder %s926_s21, 1  ;;  %s926_s21 = sphi %s965_s21, %s16_s21  }
   0x2   : > { %p220_p1 = scmp.lt.s32.totalorder %s926_s21, 3 }
   0x4   : > { %p221_p2 = pnand %p773_p0, %p220_p1 }
   0x5   : > { %p252_p3 = scmp.lt.s32.totalorder (!%p221_p2), %s769_s22, 1 }
   0x6   : > { %224 = sbr.rel (%p221_p2) target bundleno = 232 (0xe8), region = 44 }
   0xb   : > { %v266_v0 = vlaneseq  ;;  %s1205_s22 = smov (!%p252_p3, %s769_s22), 1  ;;  %v928_v12 = vmov 1.0   ;;  %v479_v24 = vld [vmem:[%s1199_s2] sm:$0xff]  ;;  %v929_v27 = vmov 0   ;;  %v605_v28 = vld [vmem:[%s1201_s4 + $0x10] sm:$0xff]  ;;  %v480_v30 = vld [vmem:[%s1199_s2 + $0x8] sm:$0xff] }
   0xc   : > { %s976_s23 = sshll.u32 %s1205_s22, 1  ;;  %v483_v25 = vld [vmem:[%s1200_s3] sm:$0xff]  ;;  %917 = vset.pattern.permute.xlu0 %v929_v27  ;;  %918 = vset.pattern.permute.xlu1 %v929_v27  ;;  %v484_v31 = vld [vmem:[%s1200_s3 + $0x8] sm:$0xff]  ;;  %v606_v33 = vld [vmem:[%s1201_s4 + $0x18] sm:$0xff] }
   0xd   : > { %v974_v1 = vshrl.u32 %v266_v0, 7  ;;  %s255_s26 = scalar_lea.vmem %s1197_s0, %s976_s23  ;;  %s259_s29 = scalar_lea.vmem %s1198_s1, %s976_s23  ;;  %v603_v26 = vld [vmem:[%s1201_s4] sm:$0xff]  ;;  %619 = vperm.xlu1 %918, %v605_v28   ;;  %919 = vset.pattern.permute.xlu2 %v929_v27  ;;  %v604_v32 = vld [vmem:[%s1201_s4 + $0x8] sm:$0xff]  ;;  %v481_v35 = vld [vmem:[%s1199_s2 + $0x10] sm:$0xff] }
   0xe   : > { %v264_v4 = vld [vmem:[%s255_s26] sm:$0x3]  ;;  %609 = vperm.xlu0 %917, %v603_v26   ;;  %v644_v34 = vld [vmem:[%s1202_s5 + $0x8] sm:$0xff]  ;;  %v485_v36 = vld [vmem:[%s1200_s3 + $0x10] sm:$0xff]  ;;  %s263_s18 = scalar_lea.vmem %s1203_s6, %s976_s23 }
   0xf   : > { %v282_v2 = vadd.s32 120, %v974_v1  ;;  %v281_v3 = vadd.s32 112, %v974_v1  ;;  %v280_v5 = vadd.s32 104, %v974_v1  ;;  %v265_v6 = vld [vmem:[%s259_s29] sm:$0x3]  ;;  %v989_v7 = vperm.slane %v264_v4, 0 }
  0x10   : > { %v991_v8 = vperm.slane %v264_v4, 1  ;;  %v993_v9 = vperm.slane %v265_v6, 0  ;;  %v995_v10 = vperm.slane %v265_v6, 1  ;;  %v279_v11 = vadd.s32 96, %v974_v1  ;;  %v643_v29 = vld [vmem:[%s1202_s5] sm:$0xff]  ;;  %v645_v37 = vld [vmem:[%s1202_s5 + $0x10] sm:$0xff] }
  0x11   : > { %vm315_vm0 = vcmp.eq.s32.totalorder %v282_v2, %v989_v7  ;;  %vm313_vm2 = vcmp.eq.s32.totalorder %v281_v3, %v989_v7  ;;  %v278_v13 = vadd.s32 88, %v974_v1  ;;  %vm311_vm5 = vcmp.eq.s32.totalorder %v280_v5, %v989_v7  ;;  %649 = vperm.xlu2 %919, %v643_v29   ;;  %v646_v38 = vld [vmem:[%s1202_s5 + $0x18] sm:$0xff] }
  0x12   : > { %vm316_vm1 = vcmp.eq.s32.totalorder %v282_v2, %v991_v8  ;;  %vm314_vm3 = vcmp.eq.s32.totalorder %v281_v3, %v991_v8  ;;  %873 = vmatpush.msk.msra.mxu2 %vm315_vm0, %v928_v12  ;;  %vm413_vm4 = vcmp.eq.s32.totalorder %v282_v2, %v993_v9  ;;  %vm312_vm6 = vcmp.eq.s32.totalorder %v280_v5, %v991_v8  ;;  %v482_v39 = vld [vmem:[%s1199_s2 + $0x18] sm:$0xff] }
  0x13   : > { %889 = vmatpush.msk.msra.mxu3 %vm316_vm1, %v928_v12  ;;  %841 = vmatpush.msk.msra.mxu0 %vm413_vm4, %v928_v12  ;;  %vm414_vm7 = vcmp.eq.s32.totalorder %v282_v2, %v995_v10  ;;  %vm411_vm8 = vcmp.eq.s32.totalorder %v281_v3, %v993_v9  ;;  %vm412_vm9 = vcmp.eq.s32.totalorder %v281_v3, %v995_v10  ;;  %v277_v14 = vadd.s32 80, %v974_v1  ;;  %v486_v40 = vld [vmem:[%s1200_s3 + $0x18] sm:$0xff] }
  0x14   : > { %874 = vmatpush.msk.msra.mxu2 %vm313_vm2, %v928_v12  ;;  %857 = vmatpush.msk.msra.mxu1 %vm414_vm7, %v928_v12  ;;  %vm309_vm10 = vcmp.eq.s32.totalorder %v279_v11, %v989_v7  ;;  %vm310_vm11 = vcmp.eq.s32.totalorder %v279_v11, %v991_v8  ;;  %vm409_vm12 = vcmp.eq.s32.totalorder %v280_v5, %v993_v9  ;;  %v276_v15 = vadd.s32 72, %v974_v1 }
  0x15   : > { %890 = vmatpush.msk.msra.mxu3 %vm314_vm3, %v928_v12  ;;  %842 = vmatpush.msk.msra.mxu0 %vm411_vm8, %v928_v12  ;;  %vm410_vm13 = vcmp.eq.s32.totalorder %v280_v5, %v995_v10  ;;  %vm407_vm14 = vcmp.eq.s32.totalorder %v279_v11, %v993_v9  ;;  %vm307_vm15 = vcmp.eq.s32.totalorder %v278_v13, %v989_v7  ;;  %v275_v16 = vadd.s32 64, %v974_v1 }
  0x16   : > { %875 = vmatpush.msk.msra.mxu2 %vm311_vm5, %v928_v12  ;;  %858 = vmatpush.msk.msra.mxu1 %vm412_vm9, %v928_v12  ;;  %vm308_vm0 = vcmp.eq.s32.totalorder %v278_v13, %v991_v8  ;;  %vm408_vm1 = vcmp.eq.s32.totalorder %v279_v11, %v995_v10  ;;  %vm405_vm2 = vcmp.eq.s32.totalorder %v278_v13, %v993_v9  ;;  %v274_v17 = vadd.s32 56, %v974_v1 }
  0x17   : > { %891 = vmatpush.msk.msra.mxu3 %vm312_vm6, %v928_v12  ;;  %843 = vmatpush.msk.msra.mxu0 %vm409_vm12, %v928_v12  ;;  %vm305_vm3 = vcmp.eq.s32.totalorder %v277_v14, %v989_v7  ;;  %vm306_vm4 = vcmp.eq.s32.totalorder %v277_v14, %v991_v8  ;;  %vm406_vm5 = vcmp.eq.s32.totalorder %v278_v13, %v995_v10  ;;  %v273_v18 = vadd.s32 48, %v974_v1 }
  0x18   : > { %876 = vmatpush.msk.msra.mxu2 %vm309_vm10, %v928_v12  ;;  %859 = vmatpush.msk.msra.mxu1 %vm410_vm13, %v928_v12  ;;  %vm403_vm6 = vcmp.eq.s32.totalorder %v277_v14, %v993_v9  ;;  %vm303_vm7 = vcmp.eq.s32.totalorder %v276_v15, %v989_v7  ;;  %vm304_vm8 = vcmp.eq.s32.totalorder %v276_v15, %v991_v8  ;;  %v272_v19 = vadd.s32 40, %v974_v1 }
  0x19   : > { %892 = vmatpush.msk.msra.mxu3 %vm310_vm11, %v928_v12  ;;  %844 = vmatpush.msk.msra.mxu0 %vm407_vm14, %v928_v12  ;;  %vm404_vm9 = vcmp.eq.s32.totalorder %v277_v14, %v995_v10  ;;  %vm401_vm10 = vcmp.eq.s32.totalorder %v276_v15, %v993_v9  ;;  %vm301_vm11 = vcmp.eq.s32.totalorder %v275_v16, %v989_v7  ;;  %v271_v20 = vadd.s32 32, %v974_v1 }
  0x1a   : > { %877 = vmatpush.msk.msra.mxu2 %vm307_vm15, %v928_v12  ;;  %860 = vmatpush.msk.msra.mxu1 %vm408_vm1, %v928_v12  ;;  %vm302_vm12 = vcmp.eq.s32.totalorder %v275_v16, %v991_v8  ;;  %vm402_vm13 = vcmp.eq.s32.totalorder %v276_v15, %v995_v10  ;;  %vm399_vm14 = vcmp.eq.s32.totalorder %v275_v16, %v993_v9  ;;  %v270_v21 = vadd.s32 24, %v974_v1 }
  0x1b   : > { %893 = vmatpush.msk.msra.mxu3 %vm308_vm0, %v928_v12  ;;  %845 = vmatpush.msk.msra.mxu0 %vm405_vm2, %v928_v12  ;;  %vm299_vm15 = vcmp.eq.s32.totalorder %v274_v17, %v989_v7  ;;  %vm300_vm0 = vcmp.eq.s32.totalorder %v274_v17, %v991_v8  ;;  %vm400_vm1 = vcmp.eq.s32.totalorder %v275_v16, %v995_v10  ;;  %v269_v22 = vadd.s32 16, %v974_v1 }
  0x1c   : > { %878 = vmatpush.msk.msra.mxu2 %vm305_vm3, %v928_v12  ;;  %861 = vmatpush.msk.msra.mxu1 %vm406_vm5, %v928_v12  ;;  %vm397_vm2 = vcmp.eq.s32.totalorder %v274_v17, %v993_v9  ;;  %vm297_vm3 = vcmp.eq.s32.totalorder %v273_v18, %v989_v7  ;;  %vm398_vm5 = vcmp.eq.s32.totalorder %v274_v17, %v995_v10  ;;  %v268_v23 = vadd.s32 8, %v974_v1 }
  0x1d   : > { %894 = vmatpush.msk.msra.mxu3 %vm306_vm4, %v928_v12  ;;  %846 = vmatpush.msk.msra.mxu0 %vm403_vm6, %v928_v12  ;;  %vm298_vm4 = vcmp.eq.s32.totalorder %v273_v18, %v991_v8  ;;  %vm395_vm6 = vcmp.eq.s32.totalorder %v273_v18, %v993_v9 }
  0x1e   : > { %879 = vmatpush.msk.msra.mxu2 %vm303_vm7, %v928_v12  ;;  %862 = vmatpush.msk.msra.mxu1 %vm404_vm9, %v928_v12  ;;  %vm295_vm7 = vcmp.eq.s32.totalorder %v272_v19, %v989_v7  ;;  %vm396_vm9 = vcmp.eq.s32.totalorder %v273_v18, %v995_v10 }
  0x1f   : > { %895 = vmatpush.msk.msra.mxu3 %vm304_vm8, %v928_v12  ;;  %847 = vmatpush.msk.msra.mxu0 %vm401_vm10, %v928_v12  ;;  %vm296_vm8 = vcmp.eq.s32.totalorder %v272_v19, %v991_v8  ;;  %vm393_vm10 = vcmp.eq.s32.totalorder %v272_v19, %v993_v9 }
  0x20   : > { %880 = vmatpush.msk.msra.mxu2 %vm301_vm11, %v928_v12  ;;  %863 = vmatpush.msk.msra.mxu1 %vm402_vm13, %v928_v12  ;;  %vm293_vm11 = vcmp.eq.s32.totalorder %v271_v20, %v989_v7  ;;  %vm394_vm13 = vcmp.eq.s32.totalorder %v272_v19, %v995_v10 }
  0x21   : > { %896 = vmatpush.msk.msra.mxu3 %vm302_vm12, %v928_v12  ;;  %848 = vmatpush.msk.msra.mxu0 %vm399_vm14, %v928_v12  ;;  %vm294_vm12 = vcmp.eq.s32.totalorder %v271_v20, %v991_v8  ;;  %vm391_vm14 = vcmp.eq.s32.totalorder %v271_v20, %v993_v9 }
  0x22   : > { %881 = vmatpush.msk.msra.mxu2 %vm299_vm15, %v928_v12  ;;  %864 = vmatpush.msk.msra.mxu1 %vm400_vm1, %v928_v12  ;;  %vm291_vm15 = vcmp.eq.s32.totalorder %v270_v21, %v989_v7  ;;  %vm392_vm1 = vcmp.eq.s32.totalorder %v271_v20, %v995_v10 }
  0x23   : > { %897 = vmatpush.msk.msra.mxu3 %vm300_vm0, %v928_v12  ;;  %849 = vmatpush.msk.msra.mxu0 %vm397_vm2, %v928_v12  ;;  %vm292_vm0 = vcmp.eq.s32.totalorder %v270_v21, %v991_v8  ;;  %vm389_vm2 = vcmp.eq.s32.totalorder %v270_v21, %v993_v9 }
  0x24   : > { %882 = vmatpush.msk.msra.mxu2 %vm297_vm3, %v928_v12  ;;  %865 = vmatpush.msk.msra.mxu1 %vm398_vm5, %v928_v12  ;;  %vm289_vm3 = vcmp.eq.s32.totalorder %v269_v22, %v989_v7  ;;  %vm390_vm5 = vcmp.eq.s32.totalorder %v270_v21, %v995_v10 }
  0x25   : > { %898 = vmatpush.msk.msra.mxu3 %vm298_vm4, %v928_v12  ;;  %850 = vmatpush.msk.msra.mxu0 %vm395_vm6, %v928_v12  ;;  %vm290_vm4 = vcmp.eq.s32.totalorder %v269_v22, %v991_v8  ;;  %vm387_vm6 = vcmp.eq.s32.totalorder %v269_v22, %v993_v9 }
  0x26   : > { %883 = vmatpush.msk.msra.mxu2 %vm295_vm7, %v928_v12  ;;  %866 = vmatpush.msk.msra.mxu1 %vm396_vm9, %v928_v12  ;;  %vm287_vm7 = vcmp.eq.s32.totalorder %v268_v23, %v989_v7  ;;  %vm388_vm9 = vcmp.eq.s32.totalorder %v269_v22, %v995_v10 }
  0x27   : > { %899 = vmatpush.msk.msra.mxu3 %vm296_vm8, %v928_v12  ;;  %851 = vmatpush.msk.msra.mxu0 %vm393_vm10, %v928_v12  ;;  %vm288_vm8 = vcmp.eq.s32.totalorder %v268_v23, %v991_v8  ;;  %vm385_vm10 = vcmp.eq.s32.totalorder %v268_v23, %v993_v9 }
  0x28   : > { %884 = vmatpush.msk.msra.mxu2 %vm293_vm11, %v928_v12  ;;  %867 = vmatpush.msk.msra.mxu1 %vm394_vm13, %v928_v12  ;;  %vm285_vm11 = vcmp.eq.s32.totalorder %v974_v1, %v989_v7  ;;  %vm386_vm13 = vcmp.eq.s32.totalorder %v268_v23, %v995_v10 }
  0x29   : > { %900 = vmatpush.msk.msra.mxu3 %vm294_vm12, %v928_v12  ;;  %852 = vmatpush.msk.msra.mxu0 %vm391_vm14, %v928_v12  ;;  %vm286_vm12 = vcmp.eq.s32.totalorder %v974_v1, %v991_v8  ;;  %vm383_vm14 = vcmp.eq.s32.totalorder %v974_v1, %v993_v9 }
  0x2a   : > { %885 = vmatpush.msk.msra.mxu2 %vm291_vm15, %v928_v12  ;;  %868 = vmatpush.msk.msra.mxu1 %vm392_vm1, %v928_v12  ;;  %vm384_vm15 = vcmp.eq.s32.totalorder %v974_v1, %v995_v10  ;;  %vm701_vm1 = vcmp.lt.s32.totalorder %v266_v0, 256 }
  0x2b   : > { %901 = vmatpush.msk.msra.mxu3 %vm292_vm0, %v928_v12  ;;  %853 = vmatpush.msk.msra.mxu0 %vm389_vm2, %v928_v12  ;;  %vm696_vm0 = vcmask 1040384  }
  0x2c   : > { %886 = vmatpush.msk.msra.mxu2 %vm289_vm3, %v928_v12  ;;  %869 = vmatpush.msk.msra.mxu1 %vm390_vm5, %v928_v12 }
  0x2d   : > { %902 = vmatpush.msk.msra.mxu3 %vm290_vm4, %v928_v12  ;;  %854 = vmatpush.msk.msra.mxu0 %vm387_vm6, %v928_v12 }
  0x2e   : > { %887 = vmatpush.msk.msra.mxu2 %vm287_vm7, %v928_v12  ;;  %870 = vmatpush.msk.msra.mxu1 %vm388_vm9, %v928_v12 }
  0x2f   : > { %903 = vmatpush.msk.msra.mxu3 %vm288_vm8, %v928_v12  ;;  %855 = vmatpush.msk.msra.mxu0 %vm385_vm10, %v928_v12 }
  0x30   : > { %888 = vmatpush.msk.msra.mxu2 %vm285_vm11, %v928_v12  ;;  %871 = vmatpush.msk.msra.mxu1 %vm386_vm13, %v928_v12 }
  0x31   : > { %904 = vmatpush.msk.msra.mxu3 %vm286_vm12, %v928_v12  ;;  %561 = vmatmul.f32.vlgmr.msra.gmra.mxu2 %v479_v24 }
  0x32   : > { %590 = vmatmul.f32.vlgmr.msra.gmra.mxu3 %v479_v24  ;;  %856 = vmatpush.msk.msra.mxu0 %vm383_vm14, %v928_v12 }
  0x33   : > { %503 = vmatmul.f32.vlgmr.msra.gmra.mxu0 %v483_v25  ;;  %872 = vmatpush.msk.msra.mxu1 %vm384_vm15, %v928_v12 }
  0x34   : > { %532 = vmatmul.f32.vlgmr.msra.gmra.mxu1 %v483_v25  ;;  %614 = vperm.xlu0 %917, %v604_v32  }
  0x35   : > { %624 = vperm.xlu1 %918, %v606_v33   ;;  %654 = vperm.xlu2 %919, %v644_v34  }
  0x39   : > { %564 = vmatmul.f32.gmra.mxu2 %v480_v30 }
  0x3a   : > { %593 = vmatmul.f32.gmra.mxu3 %v480_v30 }
  0x3b   : > { %506 = vmatmul.f32.gmra.mxu0 %v484_v31 }
  0x3c   : > { %535 = vmatmul.f32.gmra.mxu1 %v484_v31  ;;  %659 = vperm.xlu0 %917, %v645_v37  }
  0x3d   : > { %664 = vperm.xlu1 %918, %v646_v38  }
  0x41   : > { %567 = vmatmul.f32.gmra.mxu2 %v481_v35 }
  0x42   : > { %596 = vmatmul.f32.gmra.mxu3 %v481_v35 }
  0x43   : > { %509 = vmatmul.f32.gmra.mxu0 %v485_v36 }
  0x44   : > { %538 = vmatmul.f32.gmra.mxu1 %v485_v36 }
  0x49   : > { %570 = vmatmul.f32.gmra.mxu2 %v482_v39 }
  0x4a   : > { %599 = vmatmul.f32.gmra.mxu3 %v482_v39 }
  0x4b   : > { %512 = vmatmul.f32.gmra.mxu0 %v486_v40 }
  0x4c   : > { %541 = vmatmul.f32.gmra.mxu1 %v486_v40 }
  0x6b   : > { %v650_v51 = vpop.permute.xlu2 %649 }
  0x7f   : > { %v620_v50 = vpop.permute.xlu1 %619 }
  0x80   : > { %v610_v46 = vpop.permute.xlu0 %609 }
  0x8f   : > { %v655_v7 = vpop.permute.xlu2 %654 }
  0xa6   : > { %v615_v58 = vpop.permute.xlu0 %614 }
  0xa7   : > { %v625_v6 = vpop.permute.xlu1 %624 }
  0xae   : > { %v660_v24 = vpop.permute.xlu0 %659 }
  0xaf   : > { %v665_v33 = vpop.permute.xlu1 %664 }
  0xb0   : > { %v504_v41 = vpop.f32.mrf.mxu0 }
  0xb1   : > { %v533_v42 = vpop.f32.mrf.mxu1 }
  0xb4   : > { %v562_v43 = vpop.f32.mrf.mxu2 }
  0xb5   : > { %v591_v44 = vpop.f32.mrf.mxu3  ;;  %v563_v55 = vadd.f32 %v562_v43, %v504_v41 }
  0xb6   : > { %v592_v56 = vadd.f32 %v591_v44, %v533_v42 }
  0xb7   : > { %v627_v2 = vadd.f32 %v610_v46, %v563_v55 }
  0xb8   : > { %v507_v45 = vpop.f32.mrf.mxu0  ;;  %v628_v3 = vadd.f32 %v610_v46, %v592_v56 }
  0xb9   : > { %v536_v47 = vpop.f32.mrf.mxu1  ;;  %v635_v10 = vmax.f32 %v627_v2, 0.0 }
  0xba   : > { %v636_v11 = vmax.f32 %v628_v3, 0.0 }
  0xbb   : > { %v667_v22 = vmul.f32 %v650_v51, %v635_v10 }
  0xbc   : > { %v565_v48 = vpop.f32.mrf.mxu2  ;;  %v668_v23 = vmul.f32 %v650_v51, %v636_v11 }
  0xbd   : > { %v594_v49 = vpop.f32.mrf.mxu3  ;;  %v566_v53 = vadd.f32 %v565_v48, %v507_v45 }
  0xbe   : > { %v595_v54 = vadd.f32 %v594_v49, %v536_v47 }
  0xbf   : > { %v629_v61 = vadd.f32 %v615_v58, %v566_v53 }
  0xc0   : > { %v510_v52 = vpop.f32.mrf.mxu0  ;;  %v630_v62 = vadd.f32 %v615_v58, %v595_v54 }
  0xc1   : > { %v539_v57 = vpop.f32.mrf.mxu1  ;;  %v637_v8 = vmax.f32 %v629_v61, 0.0 }
  0xc2   : > { %v638_v9 = vmax.f32 %v630_v62, 0.0 }
  0xc3   : > { %v669_v18 = vmul.f32 %v655_v7, %v637_v8 }
  0xc4   : > { %v568_v59 = vpop.f32.mrf.mxu2  ;;  %v670_v19 = vmul.f32 %v655_v7, %v638_v9 }
  0xc5   : > { %v597_v60 = vpop.f32.mrf.mxu3  ;;  %v569_v63 = vadd.f32 %v568_v59, %v510_v52  ;;  %v675_v29 = vadd.f32 %v669_v18, %v667_v22 }
  0xc6   : > { %v598_v1 = vadd.f32 %v597_v60, %v539_v57  ;;  %v684_v30 = vadd.f32 %v670_v19, %v668_v23 }
  0xc7   : > { %v631_v4 = vadd.f32 %v620_v50, %v569_v63 }
  0xc8   : > { %v632_v5 = vadd.f32 %v620_v50, %v598_v1  ;;  %v513_v12 = vpop.f32.mrf.mxu0 }
  0xc9   : > { %v542_v13 = vpop.f32.mrf.mxu1  ;;  %v639_v14 = vmax.f32 %v631_v4, 0.0 }
  0xca   : > { %v640_v15 = vmax.f32 %v632_v5, 0.0 }
  0xcb   : > { %v671_v25 = vmul.f32 %v660_v24, %v639_v14 }
  0xcc   : > { %v571_v16 = vpop.f32.mrf.mxu2  ;;  %v672_v26 = vmul.f32 %v660_v24, %v640_v15 }
  0xcd   : > { %v600_v17 = vpop.f32.mrf.mxu3  ;;  %v572_v20 = vadd.f32 %v571_v16, %v513_v12  ;;  %v676_v34 = vadd.f32 %v675_v29, %v671_v25 }
  0xce   : > { %v601_v21 = vadd.f32 %v600_v17, %v542_v13  ;;  %v685_v35 = vadd.f32 %v684_v30, %v672_v26 }
  0xcf   : > { %v633_v27 = vadd.f32 %v625_v6, %v572_v20 }
  0xd0   : > { %v634_v28 = vadd.f32 %v625_v6, %v601_v21 }
  0xd1   : > { %v641_v31 = vmax.f32 %v633_v27, 0.0 }
  0xd2   : > { %v642_v32 = vmax.f32 %v634_v28, 0.0 }
  0xd3   : > { %v673_v36 = vmul.f32 %v665_v33, %v641_v31 }
  0xd4   : > { %v674_v37 = vmul.f32 %v665_v33, %v642_v32 }
  0xd5   : > { %v677_v38 = vadd.f32 %v676_v34, %v673_v36 }
  0xd6   : > { %v686_v39 = vadd.f32 %v685_v35, %v674_v37 }
  0xd7   : > { %v678_v40 = vrot.slane %v677_v38, 4 }
  0xd8   : > { %v687_v41 = vrot.slane %v686_v39, 4 }
  0xd9   : > { %v679_v42 = vadd.f32 %v678_v40, %v677_v38 }
  0xda   : > { %v688_v43 = vadd.f32 %v687_v41, %v686_v39 }
  0xdb   : > { %v680_v44 = vrot.slane %v679_v42, 2 }
  0xdc   : > { %v689_v45 = vrot.slane %v688_v43, 2 }
  0xdd   : > { %v681_v46 = vadd.f32 %v680_v44, %v679_v42 }
  0xde   : > { %v690_v47 = vadd.f32 %v689_v45, %v688_v43 }
  0xdf   : > { %v682_v48 = vrot.slane %v681_v46, 1 }
  0xe0   : > { %v691_v49 = vrot.slane %v690_v47, 1 }
  0xe1   : > { %v683_v51 = vadd.f32 %v682_v48, %v681_v46 }
  0xe2   : > { %v692_v50 = vadd.f32 %v691_v49, %v690_v47 }
  0xe4   : > { %v695_v52 = vrot.slane %v692_v50, 7 }
  0xe6   : > { %v697_v53 = vsel %vm696_vm0, %v683_v51, %v695_v52 }
  0xe7   : > { %703 = vst.msk [vmem:[%s263_s18] sm:$0x3] %vm701_vm1, %v697_v53 }
  0xe8 PF: > { %s16_s21 = sadd.s32 1, %s926_s21  }
  0xe9   : > { %p13_p4 = scmp.ge.s32.totalorder %s16_s21, 4  }
  0xeb   :  { %15 = sbr.rel (!%p13_p4) target bundleno = 1 (0x1), region = 77 }

</bundles_post_ra>
